<compile_context>
chip_gen: v7x
topology: tpu7x:2x2x1
jax: 0.10.0
libtpu: 0.0.40
codegen_flags: <defaults>
</compile_context>

<pallas_src>
import math

import jax
import jax.numpy as jnp
from jax.experimental import pallas as pl
from jax.experimental.pallas import tpu as pltpu


def _round_up(x, m):
    return ((x + m - 1) // m) * m


# ---------------------------------------------------------------------------
# Pallas kernel: fused fusion + per-modality projection heads
# ---------------------------------------------------------------------------
def sugrm_heads_kernel(
    x_ref,       # (tm, 3D)   bf16  [text | audio | video] activations
    w1_ref,      # (3D, 4Dp)  bf16  stage-1 fused weight
    b1_ref,      # (1, 4Dp)   f32
    w2_ref,      # (4Dp, 4Dp) bf16 block-diag  OR  (4, Dp, Dp) bf16 stacked
    b2_ref,      # (1, 4Dp)   f32
    wo_ref,      # (1, 4Dp)   f32   out_layer weights, lane-packed
    bo_ref,      # (4,)       f32   SMEM out_layer biases
    scores_ref,  # (tm, 128)  f32   lanes 0..3 = [M, T, A, V]
    feats_ref,   # (tm, 4Dp)  f32   [feat_f | feat_t | feat_a | feat_v]
):
    tm = x_ref.shape[0]
    Dp = feats_ref.shape[1] // 4

    # ---- stage 1: one wide MXU matmul (K = 3D, N = 4Dp), f32 accumulation --
    pre = jnp.dot(x_ref[...], w1_ref[...], preferred_element_type=jnp.float32)
    hid = jnp.maximum(pre + b1_ref[...], 0.0)   # ReLU; dropout = identity

    lane = jax.lax.broadcasted_iota(jnp.int32, (tm, 128), 1)
    scores = jnp.zeros((tm, 128), jnp.float32)

    if w2_ref.ndim == 2:
        # ---- stage 2 (fused): block-diagonal (4Dp, 4Dp) matmul ------------
        feat = jnp.dot(hid.astype(jnp.bfloat16), w2_ref[...],
                       preferred_element_type=jnp.float32) + b2_ref[...]
        feats_ref[...] = feat                     # single lane-dense store
        prod = feat * wo_ref[...]                 # VPU
        for j in range(4):                        # static unroll (f, t, a, v)
            sj = jnp.sum(prod[:, j * Dp:(j + 1) * Dp], axis=-1,
                         keepdims=True) + bo_ref[j]          # XLU lane reduce
            scores = jnp.where(lane == j, sj, scores)
    else:
        # ---- stage 2 (per-head): direct slice stores, one feat live -------
        # TODO(synk): for very large D, stage 1 could also be split per head
        # to avoid the ~2x zero-block FLOPs of the fused layout.
        for j in range(4):
            sl = slice(j * Dp, (j + 1) * Dp)
            feat_j = jnp.dot(hid[:, sl].astype(jnp.bfloat16), w2_ref[j],
                             preferred_element_type=jnp.float32) + b2_ref[:, sl]
            feats_ref[:, sl] = feat_j
            sj = jnp.sum(feat_j * wo_ref[:, sl], axis=-1,
                         keepdims=True) + bo_ref[j]
            scores = jnp.where(lane == j, sj, scores)

    scores_ref[...] = scores                      # lane-dense (tm, 128) store


def sugrm_heads(text_h, audio_h, video_h, packed, *, tm_max=1024, min_blocks=2):
    """text_h/audio_h/video_h: (B, D) f32 features; packed: kernel layout."""
    B, D = text_h.shape
    w1, b1, w2, b2, wo, bo = packed
    Dp = b1.shape[1] // 4

    # One bf16 activation stream: [text | audio | video]  (B, 3D).
    x_cat = jnp.concatenate([text_h, audio_h, video_h],
                            axis=-1).astype(jnp.bfloat16)

    # Tile selection: >= min_blocks grid steps when the batch allows (v7x has
    # two TensorCores), tm a multiple of 8, capped at tm_max, last block not
    # mostly padding.
    n_blk = 1 if B <= 8 else max(min_blocks, pl.cdiv(B, tm_max))
    tm = _round_up(pl.cdiv(B, n_blk), 8)
    n_blk = pl.cdiv(B, tm)
    Bp = n_blk * tm
    if Bp != B:
        x_cat = jnp.pad(x_cat, ((0, Bp - B), (0, 0)))

    # Explicit VMEM budget: resident weights (double-buffered by the pipeline)
    # + double-buffered activation/output streams + slack.
    weight_bytes = (int(w1.size) + int(w2.size)) * 2 \
        + (int(b1.size) + int(b2.size) + int(wo.size)) * 4
    stream_bytes = tm * (int(x_cat.shape[1]) * 2 + 128 * 4 + 4 * Dp * 4)
    vmem_bytes = 2 * weight_bytes + 2 * stream_bytes + (4 << 20)
    vmem_bytes = max(32 << 20, min(vmem_bytes, 64 << 20))

    def resident(arr):
        nd = arr.ndim
        return pl.BlockSpec(arr.shape, lambda i, _n=nd: (0,) * _n)
    # TODO(synk): on v7x large-D configs, mark the resident weight specs
    # pipeline_mode=pl.Buffered(1) (single-buffer constant blocks) once that
    # is verified on the target jax version.

    scores, feats = pl.pallas_call(
        sugrm_heads_kernel,
        out_shape=(
            jax.ShapeDtypeStruct((Bp, 128), jnp.float32),
            jax.ShapeDtypeStruct((Bp, 4 * Dp), jnp.float32),
        ),
        grid=(n_blk,),
        in_specs=[
            pl.BlockSpec((tm, x_cat.shape[1]), lambda i: (i, 0)),
            resident(w1), resident(b1), resident(w2), resident(b2),
            resident(wo),
            pl.BlockSpec(memory_space=pltpu.MemorySpace.SMEM),   # bo scalars
        ],
        out_specs=(
            pl.BlockSpec((tm, 128), lambda i: (i, 0)),
            pl.BlockSpec((tm, 4 * Dp), lambda i: (i, 0)),
        ),
        compiler_params=pltpu.CompilerParams(
            dimension_semantics=("parallel",),
            vmem_limit_bytes=int(vmem_bytes),
        ),
    )(x_cat, w1, b1, w2, b2, wo, bo)

    out_f = scores[:B, 0:1]
    out_t = scores[:B, 1:2]
    out_a = scores[:B, 2:3]
    out_v = scores[:B, 3:4]
    feat_f = feats[:B, 0 * Dp:0 * Dp + D]
    feat_t = feats[:B, 1 * Dp:1 * Dp + D]
    feat_a = feats[:B, 2 * Dp:2 * Dp + D]
    feat_v = feats[:B, 3 * Dp:3 * Dp + D]
    return out_f, out_t, out_a, out_v, feat_f, feat_t, feat_a, feat_v


# ---------------------------------------------------------------------------
# Parameter init (PyTorch nn.Linear-style uniform) + kernel packing
# ---------------------------------------------------------------------------
def linear_params(key, din, dout):
    kw, kb = jax.random.split(key)
    bound = 1.0 / math.sqrt(din)
    w = jax.random.uniform(kw, (din, dout), jnp.float32, -bound, bound)
    b = jax.random.uniform(kb, (dout,), jnp.float32, -bound, bound)
    return w, b


def make_sugrm_params(key, combined_dim):
    """Returns (torch-style dict, packed kernel tuple)."""
    D = combined_dim
    Dp = _round_up(D, 128)
    keys = jax.random.split(key, 12)

    # fusion head: proj1_f (3D -> D), proj2_f (D -> D), out_layer_f (D -> 1)
    w1f, b1f = linear_params(keys[0], 3 * D, D)
    w2f, b2f = linear_params(keys[1], D, D)
    wof, bof = linear_params(keys[2], D, 1)

    # per-modality heads in order (t, a, v)
    per = []
    for i in range(3):
        w1i, b1i = linear_params(keys[3 + 3 * i], D, D)
        w2i, b2i = linear_params(keys[4 + 3 * i], D, D)
        woi, boi = linear_params(keys[5 + 3 * i], D, 1)
        per.append((w1i, b1i, w2i, b2i, woi, boi))

    torch_style = dict(w1f=w1f, b1f=b1f, w2f=w2f, b2f=b2f, wof=wof, bof=bof,
                       per=per)

    # ---- packed kernel layout (head order: fusion, text, audio, video) ----
    # Stage-1 fused weight: columns [0:D] = full proj1_f (single K=3D matmul,
    # same accumulation order as PyTorch); columns [(j+1)Dp : (j+1)Dp+D] =
    # modality j's own proj1 on its K rows (block-diagonal).
    w1 = jnp.zeros((3 * D, 4 * Dp), jnp.float32)
    w1 = w1.at[:, :D].set(w1f)
    for i in range(3):
        w1 = w1.at[i * D:(i + 1) * D,
                   (i + 1) * Dp:(i + 1) * Dp + D].set(per[i][0])
    w1 = w1.astype(jnp.bfloat16)

    def pack_rows(vals):      # list of 4 (D,) vectors -> (1, 4Dp) f32
        out = jnp.zeros((1, 4 * Dp), jnp.float32)
        for j, v in enumerate(vals):
            out = out.at[0, j * Dp:j * Dp + D].set(v)
        return out

    b1 = pack_rows([b1f] + [per[i][1] for i in range(3)])

    w2_heads = [w2f] + [per[i][2] for i in range(3)]
    if Dp <= 128:
        # Small D: fuse stage 2 into one block-diagonal (4Dp, 4Dp) matmul.
        w2 = jnp.zeros((4 * Dp, 4 * Dp), jnp.float32)
        for j in range(4):
            w2 = w2.at[j * Dp:j * Dp + D, j * Dp:j * Dp + D].set(w2_heads[j])
        w2 = w2.astype(jnp.bfloat16)
    else:
        # Large D: stacked per-head weights (no block-diagonal zero FLOPs).
        w2 = jnp.zeros((4, Dp, Dp), jnp.float32)
        for j in range(4):
            w2 = w2.at[j, :D, :D].set(w2_heads[j])
        w2 = w2.astype(jnp.bfloat16)

    b2 = pack_rows([b2f] + [per[i][3] for i in range(3)])
    wo = pack_rows([wof.reshape(D)] + [per[i][4].reshape(D) for i in range(3)])
    bo = jnp.concatenate([bof] + [per[i][5] for i in range(3)])   # (4,) f32

    packed = (w1, b1, w2, b2, wo, bo)
    return torch_style, packed


# ---------------------------------------------------------------------------
# Encoder stand-ins (plain-JAX glue)
# ---------------------------------------------------------------------------
def stub_encode(x_seq, w, b):
    pooled = jnp.mean(x_seq, axis=1)        # (B, feat_dim)
    return jnp.tanh(pooled @ w + b)         # (B, combined_dim)


def sugrm_forward(text, audio_pack, video_pack, enc_params, packed_head_params):
    audio, _audio_lengths = audio_pack
    video, _video_lengths = video_pack
    (wt, bt), (wa, ba), (wv, bv) = enc_params
    text_h = stub_encode(text, wt, bt)      # h_t[-1]
    audio_h = stub_encode(audio, wa, ba)    # h_a[-1]
    video_h = stub_encode(video, wv, bv)    # h_v[-1]

    (out_f, out_t, out_a, out_v,
     feat_f, feat_t, feat_a, feat_v) = sugrm_heads(
        text_h, audio_h, video_h, packed_head_params)

    return {
        "M": out_f, "T": out_t, "A": out_a, "V": out_v,
        "Feature_t": feat_t, "Feature_a": feat_a,
        "Feature_v": feat_v, "Feature_f": feat_f,
    }


# ---------------------------------------------------------------------------
# Pure-JAX reference of the head stack (same bf16 weights/activations,
# f32 accumulation)
# ---------------------------------------------------------------------------
def ref_heads(t, a, v, ts):
    def lin_bf16(x, w, b):
        return jnp.dot(x.astype(jnp.bfloat16), w.astype(jnp.bfloat16),
                       preferred_element_type=jnp.float32) + b

    def head(x, w1, b1, w2, b2, wo, bo):
        h = jnp.maximum(lin_bf16(x, w1, b1), 0.0)
        feat = lin_bf16(h, w2, b2)
        out = jnp.dot(feat, wo) + bo
        return feat, out

    fusion = jnp.concatenate([t, a, v], axis=-1)
    ff, of = head(fusion, ts["w1f"], ts["b1f"], ts["w2f"], ts["b2f"],
                  ts["wof"], ts["bof"])
    ft, ot = head(t, *ts["per"][0])
    fa, oa = head(a, *ts["per"][1])
    fv, ov = head(v, *ts["per"][2])
    return of, ot, oa, ov, ff, ft, fa, fv


# ---------------------------------------------------------------------------
if __name__ == "__main__":
    B, seq = 2, 8
    orig_d_l, audio_in, video_in = 24, 16, 20
    combined_dim = 32

    key = jax.random.PRNGKey(0)
    k_text, k_aud, k_vid, k_enc, k_heads = jax.random.split(key, 5)

    text = jax.random.normal(k_text, (B, seq, orig_d_l), jnp.float32)
    audio = jax.random.normal(k_aud, (B, seq, audio_in), jnp.float32)
    video = jax.random.normal(k_vid, (B, seq, video_in), jnp.float32)
    audio_lengths = jnp.full((B,), seq, jnp.int32)
    video_lengths = jnp.full((B,), seq, jnp.int32)

    ke1, ke2, ke3 = jax.random.split(k_enc, 3)
    enc_params = (
        linear_params(ke1, orig_d_l, combined_dim),
        linear_params(ke2, audio_in, combined_dim),
        linear_params(ke3, video_in, combined_dim),
    )
    torch_style, packed = make_sugrm_params(k_heads, combined_dim)

    res = sugrm_forward(
        text, (audio, audio_lengths), (video, video_lengths),
        enc_params, packed,
    )
    jax.block_until_ready(res)

    # shape checks
    assert res["M"].shape == (B, 1)
    assert res["T"].shape == (B, 1)
    assert res["A"].shape == (B, 1)
    assert res["V"].shape == (B, 1)
    assert res["Feature_f"].shape == (B, combined_dim)
    assert res["Feature_t"].shape == (B, combined_dim)
    assert res["Feature_a"].shape == (B, combined_dim)
    assert res["Feature_v"].shape == (B, combined_dim)

    # correctness vs pure-JAX reference (same bf16 weights, f32 accumulation)
    (wt, bt), (wa, ba), (wv, bv) = enc_params
    text_h = stub_encode(text, wt, bt)
    audio_h = stub_encode(audio, wa, ba)
    video_h = stub_encode(video, wv, bv)
    ref = ref_heads(text_h, audio_h, video_h, torch_style)
    got = (res["M"], res["T"], res["A"], res["V"],
           res["Feature_f"], res["Feature_t"], res["Feature_a"], res["Feature_v"])
    names = ("M", "T", "A", "V", "Feature_f", "Feature_t", "Feature_a", "Feature_v")
    for name, gx, rx in zip(names, got, ref):
        assert gx.shape == rx.shape, name
        assert bool(jnp.allclose(gx, rx, rtol=2e-2, atol=2e-3)), name

    print("KERNEL_OK")
</pallas_src>

<mosaic_0001>
module attributes {stable_mosaic.version = 11 : i64} {
  func.func @sugrm_heads_kernel(%arg0: i32, %arg1: memref<8x96xbf16, #tpu.memory_space<vmem>>, %arg2: memref<96x512xbf16, #tpu.memory_space<vmem>>, %arg3: memref<1x512xf32, #tpu.memory_space<vmem>>, %arg4: memref<512x512xbf16, #tpu.memory_space<vmem>>, %arg5: memref<1x512xf32, #tpu.memory_space<vmem>>, %arg6: memref<1x512xf32, #tpu.memory_space<vmem>>, %arg7: memref<4xf32, #tpu.memory_space<smem>>, %arg8: memref<8x128xf32, #tpu.memory_space<vmem>>, %arg9: memref<8x512xf32, #tpu.memory_space<vmem>>) attributes {dimension_semantics = [#tpu.dimension_semantics<parallel>], iteration_bounds = array<i64: 1>, scalar_prefetch = 0 : i64, scratch_operands = 0 : i64, tpu.core_type = #tpu.core_type<tc>, window_params = [{transform_indices = @transform_0, window_bounds = array<i64: 8, 96>}, {pipeline_mode = #tpu.pipeline_mode<synchronous>, transform_indices = @transform_1, window_bounds = array<i64: 96, 512>}, {pipeline_mode = #tpu.pipeline_mode<synchronous>, transform_indices = @transform_2, window_bounds = array<i64: 1, 512>}, {pipeline_mode = #tpu.pipeline_mode<synchronous>, transform_indices = @transform_3, window_bounds = array<i64: 512, 512>}, {pipeline_mode = #tpu.pipeline_mode<synchronous>, transform_indices = @transform_4, window_bounds = array<i64: 1, 512>}, {pipeline_mode = #tpu.pipeline_mode<synchronous>, transform_indices = @transform_5, window_bounds = array<i64: 1, 512>}, {transform_indices = @transform_6, window_bounds = array<i64: 4>}, {transform_indices = @transform_7, window_bounds = array<i64: 8, 128>}, {transform_indices = @transform_8, window_bounds = array<i64: 8, 512>}]} {
    %c0 = arith.constant 0 : index
    %c0_0 = arith.constant 0 : index
    %0 = vector.load %arg1[%c0, %c0_0] : memref<8x96xbf16, #tpu.memory_space<vmem>>, vector<8x96xbf16>
    %c0_1 = arith.constant 0 : index
    %c0_2 = arith.constant 0 : index
    %1 = vector.load %arg2[%c0_1, %c0_2] : memref<96x512xbf16, #tpu.memory_space<vmem>>, vector<96x512xbf16>
    %cst = arith.constant dense<0.000000e+00> : vector<8x512xf32>
    %2 = tpu.matmul %0, %1, %cst {dimension_numbers = #tpu.dot_dimension_numbers<[1], [0], [0], [1], [0, 0, 1, 1], [], []>} : vector<8x96xbf16>, vector<96x512xbf16>, vector<8x512xf32> -> vector<8x512xf32>
    %c0_3 = arith.constant 0 : index
    %c0_4 = arith.constant 0 : index
    %3 = vector.load %arg3[%c0_3, %c0_4] : memref<1x512xf32, #tpu.memory_space<vmem>>, vector<1x512xf32>
    %4 = vector.broadcast %3 : vector<1x512xf32> to vector<8x512xf32>
    %5 = arith.addf %2, %4 : vector<8x512xf32>
    %cst_5 = arith.constant 0.000000e+00 : f32
    %6 = vector.broadcast %cst_5 : f32 to vector<8x512xf32>
    %7 = arith.maximumf %5, %6 : vector<8x512xf32>
    %8 = tpu.iota {dimensions = array<i32: 1>} : vector<8x128xi32>
    %cst_6 = arith.constant 0.000000e+00 : f32
    %9 = vector.broadcast %cst_6 : f32 to vector<8x128xf32>
    %10 = arith.truncf %7 : vector<8x512xf32> to vector<8x512xbf16>
    %c0_7 = arith.constant 0 : index
    %c0_8 = arith.constant 0 : index
    %11 = vector.load %arg4[%c0_7, %c0_8] : memref<512x512xbf16, #tpu.memory_space<vmem>>, vector<512x512xbf16>
    %cst_9 = arith.constant dense<0.000000e+00> : vector<8x512xf32>
    %12 = tpu.matmul %10, %11, %cst_9 {dimension_numbers = #tpu.dot_dimension_numbers<[1], [0], [0], [1], [0, 0, 1, 1], [], []>} : vector<8x512xbf16>, vector<512x512xbf16>, vector<8x512xf32> -> vector<8x512xf32>
    %c0_10 = arith.constant 0 : index
    %c0_11 = arith.constant 0 : index
    %13 = vector.load %arg5[%c0_10, %c0_11] : memref<1x512xf32, #tpu.memory_space<vmem>>, vector<1x512xf32>
    %14 = vector.broadcast %13 : vector<1x512xf32> to vector<8x512xf32>
    %15 = arith.addf %12, %14 : vector<8x512xf32>
    %c0_12 = arith.constant 0 : index
    %c0_13 = arith.constant 0 : index
    %16 = vector.load %arg9[%c0_12, %c0_13] : memref<8x512xf32, #tpu.memory_space<vmem>>, vector<8x512xf32>
    tpu.vector_store %arg9[%c0_12, %c0_13], %15 {strides = array<i32>} : memref<8x512xf32, #tpu.memory_space<vmem>>, vector<8x512xf32>,
    %c0_14 = arith.constant 0 : index
    %c0_15 = arith.constant 0 : index
    %17 = vector.load %arg6[%c0_14, %c0_15] : memref<1x512xf32, #tpu.memory_space<vmem>>, vector<1x512xf32>
    %18 = vector.broadcast %17 : vector<1x512xf32> to vector<8x512xf32>
    %19 = arith.mulf %15, %18 : vector<8x512xf32>
    %20 = vector.extract_strided_slice %19 {offsets = [0, 0], sizes = [8, 128], strides = [1, 1]} : vector<8x512xf32> to vector<8x128xf32>
    %cst_16 = arith.constant dense<0.000000e+00> : vector<8xf32>
    %21 = vector.multi_reduction <add>, %20, %cst_16 [1] : vector<8x128xf32> to vector<8xf32>
    %22 = vector.shape_cast %21 : vector<8xf32> to vector<8x1xf32>
    %c0_17 = arith.constant 0 : index
    %23 = memref.load %arg7[%c0_17] : memref<4xf32, #tpu.memory_space<smem>>
    %24 = vector.broadcast %23 : f32 to vector<8x1xf32>
    %25 = arith.addf %22, %24 : vector<8x1xf32>
    %c0_i32 = arith.constant 0 : i32
    %26 = vector.broadcast %c0_i32 : i32 to vector<8x128xi32>
    %27 = arith.cmpi eq, %8, %26 : vector<8x128xi32>
    %28 = vector.shape_cast %25 : vector<8x1xf32> to vector<8x1xf32>
    %29 = vector.broadcast %28 : vector<8x1xf32> to vector<8x128xf32>
    %30 = arith.select %27, %29, %9 : vector<8x128xi1>, vector<8x128xf32>
    %31 = vector.extract_strided_slice %19 {offsets = [0, 128], sizes = [8, 128], strides = [1, 1]} : vector<8x512xf32> to vector<8x128xf32>
    %cst_18 = arith.constant dense<0.000000e+00> : vector<8xf32>
    %32 = vector.multi_reduction <add>, %31, %cst_18 [1] : vector<8x128xf32> to vector<8xf32>
    %33 = vector.shape_cast %32 : vector<8xf32> to vector<8x1xf32>
    %c1 = arith.constant 1 : index
    %34 = memref.load %arg7[%c1] : memref<4xf32, #tpu.memory_space<smem>>
    %35 = vector.broadcast %34 : f32 to vector<8x1xf32>
    %36 = arith.addf %33, %35 : vector<8x1xf32>
    %c1_i32 = arith.constant 1 : i32
    %37 = vector.broadcast %c1_i32 : i32 to vector<8x128xi32>
    %38 = arith.cmpi eq, %8, %37 : vector<8x128xi32>
    %39 = vector.shape_cast %36 : vector<8x1xf32> to vector<8x1xf32>
    %40 = vector.broadcast %39 : vector<8x1xf32> to vector<8x128xf32>
    %41 = arith.select %38, %40, %30 : vector<8x128xi1>, vector<8x128xf32>
    %42 = vector.extract_strided_slice %19 {offsets = [0, 256], sizes = [8, 128], strides = [1, 1]} : vector<8x512xf32> to vector<8x128xf32>
    %cst_19 = arith.constant dense<0.000000e+00> : vector<8xf32>
    %43 = vector.multi_reduction <add>, %42, %cst_19 [1] : vector<8x128xf32> to vector<8xf32>
    %44 = vector.shape_cast %43 : vector<8xf32> to vector<8x1xf32>
    %c2 = arith.constant 2 : index
    %45 = memref.load %arg7[%c2] : memref<4xf32, #tpu.memory_space<smem>>
    %46 = vector.broadcast %45 : f32 to vector<8x1xf32>
    %47 = arith.addf %44, %46 : vector<8x1xf32>
    %c2_i32 = arith.constant 2 : i32
    %48 = vector.broadcast %c2_i32 : i32 to vector<8x128xi32>
    %49 = arith.cmpi eq, %8, %48 : vector<8x128xi32>
    %50 = vector.shape_cast %47 : vector<8x1xf32> to vector<8x1xf32>
    %51 = vector.broadcast %50 : vector<8x1xf32> to vector<8x128xf32>
    %52 = arith.select %49, %51, %41 : vector<8x128xi1>, vector<8x128xf32>
    %53 = vector.extract_strided_slice %19 {offsets = [0, 384], sizes = [8, 128], strides = [1, 1]} : vector<8x512xf32> to vector<8x128xf32>
    %cst_20 = arith.constant dense<0.000000e+00> : vector<8xf32>
    %54 = vector.multi_reduction <add>, %53, %cst_20 [1] : vector<8x128xf32> to vector<8xf32>
    %55 = vector.shape_cast %54 : vector<8xf32> to vector<8x1xf32>
    %c3 = arith.constant 3 : index
    %56 = memref.load %arg7[%c3] : memref<4xf32, #tpu.memory_space<smem>>
    %57 = vector.broadcast %56 : f32 to vector<8x1xf32>
    %58 = arith.addf %55, %57 : vector<8x1xf32>
    %c3_i32 = arith.constant 3 : i32
    %59 = vector.broadcast %c3_i32 : i32 to vector<8x128xi32>
    %60 = arith.cmpi eq, %8, %59 : vector<8x128xi32>
    %61 = vector.shape_cast %58 : vector<8x1xf32> to vector<8x1xf32>
    %62 = vector.broadcast %61 : vector<8x1xf32> to vector<8x128xf32>
    %63 = arith.select %60, %62, %52 : vector<8x128xi1>, vector<8x128xf32>
    %c0_21 = arith.constant 0 : index
    %c0_22 = arith.constant 0 : index
    %64 = vector.load %arg8[%c0_21, %c0_22] : memref<8x128xf32, #tpu.memory_space<vmem>>, vector<8x128xf32>
    tpu.vector_store %arg8[%c0_21, %c0_22], %63 {strides = array<i32>} : memref<8x128xf32, #tpu.memory_space<vmem>>, vector<8x128xf32>,
    return
  }
  func.func @transform_0(%arg0: i32) -> (i32, i32) {
    %c0_i32 = arith.constant 0 : i32
    %c0_i32_0 = arith.constant 0 : i32
    return %arg0, %c0_i32 : i32, i32
  }
  func.func @transform_1(%arg0: i32) -> (i32, i32) {
    %c0_i32 = arith.constant 0 : i32
    %c0_i32_0 = arith.constant 0 : i32
    %c0_i32_1 = arith.constant 0 : i32
    return %c0_i32, %c0_i32_0 : i32, i32
  }
  func.func @transform_2(%arg0: i32) -> (i32, i32) {
    %c0_i32 = arith.constant 0 : i32
    %c0_i32_0 = arith.constant 0 : i32
    %c0_i32_1 = arith.constant 0 : i32
    return %c0_i32, %c0_i32_0 : i32, i32
  }
  func.func @transform_3(%arg0: i32) -> (i32, i32) {
    %c0_i32 = arith.constant 0 : i32
    %c0_i32_0 = arith.constant 0 : i32
    %c0_i32_1 = arith.constant 0 : i32
    return %c0_i32, %c0_i32_0 : i32, i32
  }
  func.func @transform_4(%arg0: i32) -> (i32, i32) {
    %c0_i32 = arith.constant 0 : i32
    %c0_i32_0 = arith.constant 0 : i32
    %c0_i32_1 = arith.constant 0 : i32
    return %c0_i32, %c0_i32_0 : i32, i32
  }
  func.func @transform_5(%arg0: i32) -> (i32, i32) {
    %c0_i32 = arith.constant 0 : i32
    %c0_i32_0 = arith.constant 0 : i32
    %c0_i32_1 = arith.constant 0 : i32
    return %c0_i32, %c0_i32_0 : i32, i32
  }
  func.func @transform_6(%arg0: i32) -> i32 {
    %c0_i32 = arith.constant 0 : i32
    %c0_i32_0 = arith.constant 0 : i32
    return %c0_i32 : i32
  }
  func.func @transform_7(%arg0: i32) -> (i32, i32) {
    %c0_i32 = arith.constant 0 : i32
    %c0_i32_0 = arith.constant 0 : i32
    return %arg0, %c0_i32 : i32, i32
  }
  func.func @transform_8(%arg0: i32) -> (i32, i32) {
    %c0_i32 = arith.constant 0 : i32
    %c0_i32_0 = arith.constant 0 : i32
    return %arg0, %c0_i32 : i32, i32
  }
}

</mosaic_0001>

<bundles_post_ra>
// kernel: tpu_custom_call.1
= control target key start
LH: loop header
LB: loop body
LE: loop exit
PB: predicated region body
PF: predicated region fallthrough
CT: control target
= control target key end

     0   :  { %14 = vsyncpa [#allocation3], 0  ;;  %s2094_s0 = inlined_call_operand.hbm [shape: bf16[8,96], index: 0, kind: input, shape index: {}]   ;;  %s2095_s1 = inlined_call_operand.hbm [shape: bf16[96,512], index: 1, kind: input, shape index: {}]   ;;  %s2096_s2 = inlined_call_operand.vmem [shape: f32[1,512], index: 2, kind: input, shape index: {}]   ;;  %s2097_s3 = inlined_call_operand.hbm [shape: bf16[512,512], index: 3, kind: input, shape index: {}]   ;;  %s2098_s4 = inlined_call_operand.vmem [shape: f32[1,512], index: 4, kind: input, shape index: {}]   ;;  %s2099_s5 = inlined_call_operand.vmem [shape: f32[1,512], index: 5, kind: input, shape index: {}]   ;;  %s2100_s6 = inlined_call_operand.vmem [shape: f32[4], index: 6, kind: input, shape index: {}]   ;;  %s2101_s7 = inlined_call_operand.hbm [shape: f32[8,128], index: 7, kind: output, shape index: {0}]   ;;  %s2102_s8 = inlined_call_operand.hbm [shape: f32[8,512], index: 8, kind: output, shape index: {1}]  }
   0x1   :  { %15 = vsyncpa [#allocation7], 0 }
   0x2   :  { %16 = vsyncpa [#allocation5], 0 }
   0x3   :  { %17 = vsyncpa [#allocation4], 0 }
   0x4   :  { %18 = vsyncpa [#allocation12], 0  ;;  %s1928_s27 = smov [#allocation6]   ;;  %s1796_s9 = scalar_lea.hbm %s2095_s1, 3072 }
   0x5   :  { %s34_s28 = sshll.u32 %s1928_s27, 4  ;;  %p1797_p0 = scmp.ne.s32.totalorder %s2095_s1, %s1796_s9  ;;  %s35_s28 = int_to_ptr.vmem [resolvable:$true] %s34_s28 }
   0x6   :  { %p1800_p1 = scmp.lt.u32.totalorder %s1796_s9, %s2095_s1 }
   0x8   :  { %p1802_p2 = pnand %p1800_p1, %p1797_p0 }
   0xa   :  { %1805 = shalt.err (!%p1802_p2)
}
   0xb   :  { %s1806_s14 = scalar_lea.vmem %s35_s28, 3072  ;;  %p1811_p4 = scmp.lt.s32.totalorder %s35_s28, %s35_s28 }
   0xc   :  { %p1807_p3 = scmp.ne.s32.totalorder %s35_s28, %s1806_s14  ;;  %p1812_p5 = scmp.lt.s32.totalorder %s1806_s14, %s1806_s14 }
   0xe   :  { %p1813_p6 = por %p1812_p5, %p1811_p4 }
  0x10   :  { %p1814_p7 = pnand %p1813_p6, %p1807_p3 }
  0x12   :  { %1817 = shalt.err (!%p1814_p7)
}
  0x13   :  { %s1929_s15 = smov 256   ;;  %s1930_s16 = smov 16  }
  0x14   :  { %40 = dma.hbm_to_vmem [thread:$0]  %s2095_s1, 3072, %s35_s28, [#allocation7], %s1929_s15, %s1929_s15, %s1930_s16  }
  0x15   :  { %s1931_s19 = smov [#allocation2]   ;;  %s1932_s21 = smov [#allocation8]  }
  0x16   :  { %s25_s20 = sshll.u32 %s1931_s19, 4  ;;  %s48_s22 = sshll.u32 %s1932_s21, 4  ;;  %s26_s20 = int_to_ptr.vmem [resolvable:$true] %s25_s20  ;;  %s49_s22 = int_to_ptr.vmem [resolvable:$true] %s48_s22 }
  0x17   :  { %s1818_s25 = scalar_lea.hbm %s2094_s0, 64 }
  0x18   :  { %p1819_p8 = scmp.ne.s32.totalorder %s2094_s0, %s1818_s25  ;;  %p1822_p9 = scmp.lt.u32.totalorder %s1818_s25, %s2094_s0 }
  0x1a   :  { %p1824_p10 = pnand %p1822_p9, %p1819_p8 }
  0x1c   :  { %1827 = shalt.err (!%p1824_p10)
}
  0x1d   :  { %s1828_s1 = scalar_lea.vmem %s26_s20, 64  ;;  %p1833_p12 = scmp.lt.s32.totalorder %s26_s20, %s26_s20 }
  0x1e   :  { %p1829_p11 = scmp.ne.s32.totalorder %s26_s20, %s1828_s1  ;;  %p1834_p13 = scmp.lt.s32.totalorder %s1828_s1, %s1828_s1 }
  0x20   :  { %p1835_p0 = por %p1834_p13, %p1833_p12 }
  0x22   :  { %p1836_p1 = pnand %p1835_p0, %p1829_p11 }
  0x24   :  { %1839 = shalt.err (!%p1836_p1)
}
  0x25   :  { %28 = dma.hbm_to_vmem [thread:$0]  %s2094_s0, 64, %s26_s20, [#allocation3]  }
  0x26   :  { %s65_s12 = sshll.u32 %s2100_s6, 4  ;;  %s1840_s17 = scalar_lea.hbm %s2097_s3, 16384  ;;  %s66_s12 = int_to_ptr.vmem [resolvable:$true] %s65_s12 }
  0x27   :  { %p1841_p2 = scmp.ne.s32.totalorder %s2097_s3, %s1840_s17  ;;  %p1844_p3 = scmp.lt.u32.totalorder %s1840_s17, %s2097_s3 }
  0x29   :  { %p1846_p4 = pnand %p1844_p3, %p1841_p2 }
  0x2b   :  { %1849 = shalt.err (!%p1846_p4)
}
  0x2c   :  { %s1850_s0 = scalar_lea.vmem %s49_s22, 16384  ;;  %p1855_p6 = scmp.lt.s32.totalorder %s49_s22, %s49_s22 }
  0x2d   :  { %p1851_p5 = scmp.ne.s32.totalorder %s49_s22, %s1850_s0  ;;  %p1856_p7 = scmp.lt.s32.totalorder %s1850_s0, %s1850_s0 }
  0x2f   :  { %p1857_p8 = por %p1856_p7, %p1855_p6 }
  0x31   :  { %p1858_p9 = pnand %p1857_p8, %p1851_p5 }
  0x33   :  { %1861 = shalt.err (!%p1858_p9)
}
  0x34   :  { %54 = dma.hbm_to_vmem [thread:$0]  %s2097_s3, 16384, %s49_s22, [#allocation7], %s1929_s15, %s1929_s15, %s1930_s16  }
  0x35   :  { %s1862_s24 = scalar_lea.vmem %s66_s12, 16  ;;  %p1867_p11 = scmp.lt.s32.totalorder %s66_s12, %s66_s12 }
  0x36   :  { %p1863_p10 = scmp.ne.s32.totalorder %s66_s12, %s1862_s24  ;;  %p1868_p12 = scmp.lt.s32.totalorder %s1862_s24, %s1862_s24 }
  0x38   :  { %p1869_p13 = por %p1868_p12, %p1867_p11 }
  0x3a   :  { %p1870_p0 = pnand %p1869_p13, %p1863_p10 }
  0x3c   :  { %1873 = shalt.err (!%p1870_p0)
}
  0x3d   :  { %s1933_s25 = smov [#allocation9]  }
  0x3e   :  { %68 = dma.vmem_to_smem %s66_s12, 16, %s1933_s25, [#allocation5]  }
  0x3f   :  { %1918 = dma.done.wait [#allocation3], 64  }
  0x40   :  { %1919 = vsyncadd [#allocation3], 4294967232 }
  0x41   :  { %1920 = dma.done.wait [#allocation7], 19456  }
  0x42   :  { %1921 = vsyncadd [#allocation7], 4294947840 }
  0x43   :  { %1922 = dma.done.wait [#allocation5], 16  }
  0x44   :  { %1923 = vsyncadd [#allocation5], 4294967280 }
  0x45   :  { %81 = sfence }
  0x46   :  { %v1568_v0 = vld [vmem:[#allocation6 + $0x4] ss:$16 sps:$4 sm:$0xff]   ;;  %v1570_v1 = vld [vmem:[#allocation6] ss:$16 sps:$4 sm:$0xff]   ;;  %v1934_v2 = vmov 0   ;;  %vm250_vm0 = vcmask 785408  }
  0x47   :  { %286 = vmatprep.mubr.bf16.mxu0 %v1934_v2  ;;  %327 = vmatprep.mubr.bf16.mxu1 %v1934_v2  ;;  %v1571_v3 = vld [vmem:[#allocation6 + $0x24] ss:$16 sps:$4 sm:$0xff]   ;;  %v1573_v4 = vld [vmem:[#allocation6 + $0x20] ss:$16 sps:$4 sm:$0xff]   ;;  %v1586_v8 = vld [vmem:[#allocation6 + $0xc] ss:$16 sps:$4 sm:$0xff]  }
  0x48   :  { %254 = vmatprep.subr.bf16.mxu0 %v1568_v0  ;;  %v1574_v5 = vld [vmem:[#allocation6 + $0x44] ss:$16 sps:$4 sm:$0xff]   ;;  %v1576_v6 = vld [vmem:[#allocation6 + $0x40] ss:$16 sps:$4 sm:$0xff]   ;;  %v1588_v9 = vld [vmem:[#allocation6 + $0x8] ss:$16 sps:$4 sm:$0xff]   ;;  %295 = vmatprep.subr.bf16.mxu1 %v1586_v8 }
  0x49   :  { %255 = vmatpush1.bf16.msra.mxu0 %v1570_v1  ;;  %v1577_v7 = vld [vmem:[#allocation6 + $0x64] ss:$16 sps:$4 sm:$0xff]   ;;  %v1579_v10 = vld [vmem:[#allocation6 + $0x60] ss:$16 sps:$4 sm:$0xff]   ;;  %v1589_v11 = vld [vmem:[#allocation6 + $0x2c] ss:$16 sps:$4 sm:$0xff]   ;;  %296 = vmatpush1.bf16.msra.mxu1 %v1588_v9 }
  0x4a   :  { %256 = vmatprep.subr.bf16.mxu0 %v1571_v3  ;;  %v1580_v12 = vld [vmem:[#allocation6 + $0x84] ss:$16 sps:$4 sm:$0xff]   ;;  %v1591_v13 = vld [vmem:[#allocation6 + $0x28] ss:$16 sps:$4 sm:$0xff]   ;;  %297 = vmatprep.subr.bf16.mxu1 %v1589_v11  ;;  %v1592_v14 = vld [vmem:[#allocation6 + $0x4c] ss:$16 sps:$4 sm:$0xff]  }
  0x4b   :  { %v1582_v15 = vld [vmem:[#allocation6 + $0x80] ss:$16 sps:$4 sm:$0xff]   ;;  %v1583_v16 = vld [vmem:[#allocation6 + $0xa4] ss:$16 sps:$4 sm:$0xff]   ;;  %v1594_v17 = vld [vmem:[#allocation6 + $0x48] ss:$16 sps:$4 sm:$0xff]  }
  0x4c   :  { %v1595_v18 = vld [vmem:[#allocation6 + $0x6c] ss:$16 sps:$4 sm:$0xff]   ;;  %v1585_v19 = vld [vmem:[#allocation6 + $0xa0] ss:$16 sps:$4 sm:$0xff]   ;;  %v1597_v20 = vld [vmem:[#allocation6 + $0x68] ss:$16 sps:$4 sm:$0xff]  }
  0x4d   :  { %257 = vmatpush1.bf16.msra.mxu0 %v1573_v4  ;;  %298 = vmatpush1.bf16.msra.mxu1 %v1591_v13  ;;  %v1606_v21 = vld [vmem:[#allocation8 + $0x4] ss:$16 sps:$4 sm:$0xff]   ;;  %v1598_v22 = vld [vmem:[#allocation6 + $0x8c] ss:$16 sps:$4 sm:$0xff]   ;;  %v1600_v24 = vld [vmem:[#allocation6 + $0x88] ss:$16 sps:$4 sm:$0xff]  }
  0x4e   :  { %258 = vmatprep.subr.bf16.mxu0 %v1574_v5  ;;  %299 = vmatprep.subr.bf16.mxu1 %v1592_v14  ;;  %v83_v23 = vld [vmem:[#allocation2] sm:$0xf]  ;;  %v1604_v25 = vld [vmem:[#allocation8] ss:$16 sps:$4 sm:$0xff]   ;;  %v1612_v26 = vld [vmem:[#allocation8 + $0x24] ss:$16 sps:$4 sm:$0xff]  }
  0x4f   :  { %v1601_v27 = vld [vmem:[#allocation6 + $0xac] ss:$16 sps:$4 sm:$0xff]   ;;  %v1603_v28 = vld [vmem:[#allocation6 + $0xa8] ss:$16 sps:$4 sm:$0xff]   ;;  %v1610_v29 = vld [vmem:[#allocation8 + $0x20] ss:$16 sps:$4 sm:$0xff]  }
  0x50   :  { %v1618_v30 = vld [vmem:[#allocation8 + $0x44] ss:$16 sps:$4 sm:$0xff]   ;;  %v1609_v31 = vld [vmem:[#allocation8 + $0xc] ss:$16 sps:$4 sm:$0xff]   ;;  %v1607_v32 = vld [vmem:[#allocation8 + $0x8] ss:$16 sps:$4 sm:$0xff]  }
  0x51   :  { %259 = vmatpush1.bf16.msra.mxu0 %v1576_v6  ;;  %300 = vmatpush1.bf16.msra.mxu1 %v1594_v17  ;;  %v1616_v33 = vld [vmem:[#allocation8 + $0x40] ss:$16 sps:$4 sm:$0xff]   ;;  %v1624_v34 = vld [vmem:[#allocation8 + $0x64] ss:$16 sps:$4 sm:$0xff]   ;;  %v1615_v35 = vld [vmem:[#allocation8 + $0x2c] ss:$16 sps:$4 sm:$0xff]  }
  0x52   :  { %260 = vmatprep.subr.bf16.mxu0 %v1577_v7  ;;  %301 = vmatprep.subr.bf16.mxu1 %v1595_v18  ;;  %v1613_v36 = vld [vmem:[#allocation8 + $0x28] ss:$16 sps:$4 sm:$0xff]   ;;  %v1622_v37 = vld [vmem:[#allocation8 + $0x60] ss:$16 sps:$4 sm:$0xff]   ;;  %v1630_v38 = vld [vmem:[#allocation8 + $0x84] ss:$16 sps:$4 sm:$0xff]  }
  0x53   :  { %v1621_v39 = vld [vmem:[#allocation8 + $0x4c] ss:$16 sps:$4 sm:$0xff]   ;;  %v1619_v40 = vld [vmem:[#allocation8 + $0x48] ss:$16 sps:$4 sm:$0xff]   ;;  %v1628_v41 = vld [vmem:[#allocation8 + $0x80] ss:$16 sps:$4 sm:$0xff]  }
  0x54   :  { %v1636_v42 = vld [vmem:[#allocation8 + $0xa4] ss:$16 sps:$4 sm:$0xff]   ;;  %v1627_v43 = vld [vmem:[#allocation8 + $0x6c] ss:$16 sps:$4 sm:$0xff]   ;;  %v1625_v44 = vld [vmem:[#allocation8 + $0x68] ss:$16 sps:$4 sm:$0xff]  }
  0x55   :  { %261 = vmatpush1.bf16.msra.mxu0 %v1579_v10  ;;  %302 = vmatpush1.bf16.msra.mxu1 %v1597_v20  ;;  %v1634_v45 = vld [vmem:[#allocation8 + $0xa0] ss:$16 sps:$4 sm:$0xff]   ;;  %v1642_v46 = vld [vmem:[#allocation8 + $0xc4] ss:$16 sps:$4 sm:$0xff]   ;;  %v1633_v47 = vld [vmem:[#allocation8 + $0x8c] ss:$16 sps:$4 sm:$0xff]  }
  0x56   :  { %262 = vmatprep.subr.bf16.mxu0 %v1580_v12  ;;  %303 = vmatprep.subr.bf16.mxu1 %v1598_v22  ;;  %v1631_v48 = vld [vmem:[#allocation8 + $0x88] ss:$16 sps:$4 sm:$0xff]   ;;  %v1640_v49 = vld [vmem:[#allocation8 + $0xc0] ss:$16 sps:$4 sm:$0xff]   ;;  %v1648_v50 = vld [vmem:[#allocation8 + $0xe4] ss:$16 sps:$4 sm:$0xff]  }
  0x57   :  { %v1639_v51 = vld [vmem:[#allocation8 + $0xac] ss:$16 sps:$4 sm:$0xff]   ;;  %v1637_v52 = vld [vmem:[#allocation8 + $0xa8] ss:$16 sps:$4 sm:$0xff]   ;;  %v1646_v53 = vld [vmem:[#allocation8 + $0xe0] ss:$16 sps:$4 sm:$0xff]  }
  0x58   :  { %v1654_v54 = vld [vmem:[#allocation8 + $0x104] ss:$16 sps:$4 sm:$0xff]   ;;  %v1645_v55 = vld [vmem:[#allocation8 + $0xcc] ss:$16 sps:$4 sm:$0xff]   ;;  %v1652_v56 = vld [vmem:[#allocation8 + $0x100] ss:$16 sps:$4 sm:$0xff]  }
  0x59   :  { %263 = vmatpush1.bf16.msra.mxu0 %v1582_v15  ;;  %304 = vmatpush1.bf16.msra.mxu1 %v1600_v24  ;;  %v1643_v57 = vld [vmem:[#allocation8 + $0xc8] ss:$16 sps:$4 sm:$0xff]   ;;  %v1660_v58 = vld [vmem:[#allocation8 + $0x124] ss:$16 sps:$4 sm:$0xff]   ;;  %v1651_v59 = vld [vmem:[#allocation8 + $0xec] ss:$16 sps:$4 sm:$0xff]  }
  0x5a   :  { %264 = vmatprep.subr.bf16.mxu0 %v1583_v16  ;;  %305 = vmatprep.subr.bf16.mxu1 %v1601_v27  ;;  %v1658_v60 = vld [vmem:[#allocation8 + $0x120] ss:$16 sps:$4 sm:$0xff]   ;;  %v1649_v61 = vld [vmem:[#allocation8 + $0xe8] ss:$16 sps:$4 sm:$0xff]   ;;  %v1666_v62 = vld [vmem:[#allocation8 + $0x144] ss:$16 sps:$4 sm:$0xff]  }
  0x5b   :  { %v1657_v63 = vld [vmem:[#allocation8 + $0x10c] ss:$16 sps:$4 sm:$0xff]   ;;  %v1664_v0 = vld [vmem:[#allocation8 + $0x140] ss:$16 sps:$4 sm:$0xff]   ;;  %v1655_v1 = vld [vmem:[#allocation8 + $0x108] ss:$16 sps:$4 sm:$0xff]  }
  0x5c   :  { %v1672_v2 = vld [vmem:[#allocation8 + $0x164] ss:$16 sps:$4 sm:$0xff]   ;;  %v1663_v3 = vld [vmem:[#allocation8 + $0x12c] ss:$16 sps:$4 sm:$0xff]   ;;  %v1670_v4 = vld [vmem:[#allocation8 + $0x160] ss:$16 sps:$4 sm:$0xff]  }
  0x5d   :  { %265 = vmatpush1.bf16.msra.mxu0 %v1585_v19  ;;  %306 = vmatpush1.bf16.msra.mxu1 %v1603_v28  ;;  %v1661_v5 = vld [vmem:[#allocation8 + $0x128] ss:$16 sps:$4 sm:$0xff]   ;;  %v1678_v6 = vld [vmem:[#allocation8 + $0x184] ss:$16 sps:$4 sm:$0xff]   ;;  %v1669_v7 = vld [vmem:[#allocation8 + $0x14c] ss:$16 sps:$4 sm:$0xff]   ;;  %v110_v28 = vlaneseq }
  0x5e   :  { %1136 = vmatprep.subr.bf16.mxu0 %v1606_v21  ;;  %1218 = vmatprep.subr.bf16.mxu1 %v1609_v31  ;;  %v1676_v8 = vld [vmem:[#allocation8 + $0x180] ss:$16 sps:$4 sm:$0xff]   ;;  %v1667_v9 = vld [vmem:[#allocation8 + $0x148] ss:$16 sps:$4 sm:$0xff]   ;;  %v1684_v10 = vld [vmem:[#allocation8 + $0x1a4] ss:$16 sps:$4 sm:$0xff]  }
  0x5f   :  { %v1675_v11 = vld [vmem:[#allocation8 + $0x16c] ss:$16 sps:$4 sm:$0xff]   ;;  %v1682_v12 = vld [vmem:[#allocation8 + $0x1a0] ss:$16 sps:$4 sm:$0xff]   ;;  %v1673_v13 = vld [vmem:[#allocation8 + $0x168] ss:$16 sps:$4 sm:$0xff]  }
  0x60   :  { %1414 = vmatmul.mubr.msk.bf16.vlgmr.msra.gmra.mrb[0].mxu0 %vm250_vm0, %v83_v23  ;;  %1415 = vmatmul.mubr.msk.bf16.vlgmr.msra.gmra.mrb[0].mxu1 %vm250_vm0, %v83_v23  ;;  %v1681_v14 = vld [vmem:[#allocation8 + $0x18c] ss:$16 sps:$4 sm:$0xff]   ;;  %v1679_v15 = vld [vmem:[#allocation8 + $0x188] ss:$16 sps:$4 sm:$0xff]   ;;  %v1690_v18 = vld [vmem:[#allocation8 + $0x1c4] ss:$16 sps:$4 sm:$0xff]  }
  0x61   :  { %1137 = vmatpush1.bf16.msra.mxu0 %v1604_v25  ;;  %1219 = vmatpush1.bf16.msra.mxu1 %v1607_v32  ;;  %v1687_v16 = vld [vmem:[#allocation8 + $0x1ac] ss:$16 sps:$4 sm:$0xff]   ;;  %v1685_v17 = vld [vmem:[#allocation8 + $0x1a8] ss:$16 sps:$4 sm:$0xff]   ;;  %v1688_v20 = vld [vmem:[#allocation8 + $0x1c0] ss:$16 sps:$4 sm:$0xff]  }
  0x62   :  { %1138 = vmatprep.subr.bf16.mxu0 %v1612_v26  ;;  %1220 = vmatprep.subr.bf16.mxu1 %v1615_v35  ;;  %v1693_v19 = vld [vmem:[#allocation8 + $0x1cc] ss:$16 sps:$4 sm:$0xff]   ;;  %v1691_v21 = vld [vmem:[#allocation8 + $0x1c8] ss:$16 sps:$4 sm:$0xff]   ;;  %v1696_v22 = vld [vmem:[#allocation8 + $0x1e4] ss:$16 sps:$4 sm:$0xff]  }
  0x63   :  { %v1699_v23 = vld [vmem:[#allocation8 + $0x1ec] ss:$16 sps:$4 sm:$0xff]   ;;  %v1694_v24 = vld [vmem:[#allocation8 + $0x1e0] ss:$16 sps:$4 sm:$0xff]   ;;  %v1697_v25 = vld [vmem:[#allocation8 + $0x1e8] ss:$16 sps:$4 sm:$0xff]  }
  0x64   :  { %v1702_v26 = vld [vmem:[#allocation8 + $0x204] ss:$16 sps:$4 sm:$0xff]   ;;  %v1705_v27 = vld [vmem:[#allocation8 + $0x20c] ss:$16 sps:$4 sm:$0xff]  }
  0x65   :  { %1139 = vmatpush1.bf16.msra.mxu0 %v1610_v29  ;;  %1221 = vmatpush1.bf16.msra.mxu1 %v1613_v36  ;;  %v2030_v29 = vshrl.u32 %v110_v28, 7  ;;  %v2038_v31 = vld [vmem:[%s2096_s2] sm:$0xf] }
  0x66   :  { %1140 = vmatprep.subr.bf16.mxu0 %v1618_v30  ;;  %1222 = vmatprep.subr.bf16.mxu1 %v1621_v39 }
  0x67   :  { %v2033_v30 = vsub.s32 0, %v2030_v29  ;;  %v2041_v32 = vsub.s32 1, %v2030_v29 }
  0x69   :  { %1141 = vmatpush1.bf16.msra.mxu0 %v1616_v33  ;;  %1223 = vmatpush1.bf16.msra.mxu1 %v1619_v40  ;;  %v113_v33 = vrot.slane %v2038_v31, %v2033_v30 }
  0x6a   :  { %1142 = vmatprep.subr.bf16.mxu0 %v1624_v34  ;;  %1224 = vmatprep.subr.bf16.mxu1 %v1627_v43  ;;  %v117_v34 = vrot.slane %v2038_v31, %v2041_v32 }
  0x6d   :  { %1143 = vmatpush1.bf16.msra.mxu0 %v1622_v37  ;;  %1225 = vmatpush1.bf16.msra.mxu1 %v1625_v44 }
  0x6e   :  { %1144 = vmatprep.subr.bf16.mxu0 %v1630_v38  ;;  %1226 = vmatprep.subr.bf16.mxu1 %v1633_v47 }
  0x71   :  { %1145 = vmatpush1.bf16.msra.mxu0 %v1628_v41  ;;  %1227 = vmatpush1.bf16.msra.mxu1 %v1631_v48  ;;  %v1708_v48 = vld [vmem:[#allocation8 + $0x224] ss:$16 sps:$4 sm:$0xff]  }
  0x72   :  { %1146 = vmatprep.subr.bf16.mxu0 %v1636_v42  ;;  %1228 = vmatprep.subr.bf16.mxu1 %v1639_v51  ;;  %v2048_v42 = vsub.s32 3, %v2030_v29 }
  0x75   :  { %1147 = vmatpush1.bf16.msra.mxu0 %v1634_v45  ;;  %1229 = vmatpush1.bf16.msra.mxu1 %v1637_v52  ;;  %v1700_v45 = vld [vmem:[#allocation8 + $0x200] ss:$16 sps:$4 sm:$0xff]  }
  0x76   :  { %1148 = vmatprep.subr.bf16.mxu0 %v1642_v46  ;;  %1230 = vmatprep.subr.bf16.mxu1 %v1645_v55  ;;  %v1703_v46 = vld [vmem:[#allocation8 + $0x208] ss:$16 sps:$4 sm:$0xff]   ;;  %v1706_v52 = vld [vmem:[#allocation8 + $0x220] ss:$16 sps:$4 sm:$0xff]   ;;  %v1714_v55 = vld [vmem:[#allocation8 + $0x244] ss:$16 sps:$4 sm:$0xff]  }
  0x79   :  { %1149 = vmatpush1.bf16.msra.mxu0 %v1640_v49  ;;  %1231 = vmatpush1.bf16.msra.mxu1 %v1643_v57  ;;  %v1711_v49 = vld [vmem:[#allocation8 + $0x22c] ss:$16 sps:$4 sm:$0xff]  }
  0x7a   :  { %1150 = vmatprep.subr.bf16.mxu0 %v1648_v50  ;;  %1232 = vmatprep.subr.bf16.mxu1 %v1651_v59  ;;  %v125_v50 = vrot.slane %v2038_v31, %v2048_v42 }
  0x7d   :  { %1151 = vmatpush1.bf16.msra.mxu0 %v1646_v53  ;;  %1233 = vmatpush1.bf16.msra.mxu1 %v1649_v61  ;;  %v1709_v53 = vld [vmem:[#allocation8 + $0x228] ss:$16 sps:$4 sm:$0xff]   ;;  %v1712_v61 = vld [vmem:[#allocation8 + $0x240] ss:$16 sps:$4 sm:$0xff]  }
  0x7e   :  { %1152 = vmatprep.subr.bf16.mxu0 %v1654_v54  ;;  %1234 = vmatprep.subr.bf16.mxu1 %v1657_v63  ;;  %v1720_v63 = vld [vmem:[#allocation8 + $0x264] ss:$16 sps:$4 sm:$0xff]  }
  0x81   :  { %1153 = vmatpush1.bf16.msra.mxu0 %v1652_v56  ;;  %1235 = vmatpush1.bf16.msra.mxu1 %v1655_v1  ;;  %v1717_v56 = vld [vmem:[#allocation8 + $0x24c] ss:$16 sps:$4 sm:$0xff]  }
  0x82   :  { %1154 = vmatprep.subr.bf16.mxu0 %v1660_v58  ;;  %1236 = vmatprep.subr.bf16.mxu1 %v1663_v3  ;;  %v1721_v3 = vld [vmem:[#allocation8 + $0x268] ss:$16 sps:$4 sm:$0xff]  }
  0x85   :  { %1155 = vmatpush1.bf16.msra.mxu0 %v1658_v60  ;;  %1237 = vmatpush1.bf16.msra.mxu1 %v1661_v5  ;;  %v1729_v5 = vld [vmem:[#allocation8 + $0x28c] ss:$16 sps:$4 sm:$0xff]  }
  0x86   :  { %1156 = vmatprep.subr.bf16.mxu0 %v1666_v62  ;;  %1238 = vmatprep.subr.bf16.mxu1 %v1669_v7  ;;  %v1715_v62 = vld [vmem:[#allocation8 + $0x248] ss:$16 sps:$4 sm:$0xff]  }
  0x87   :  { %v1727_v7 = vld [vmem:[#allocation8 + $0x288] ss:$16 sps:$4 sm:$0xff]  }
  0x89   :  { %1157 = vmatpush1.bf16.msra.mxu0 %v1664_v0  ;;  %1239 = vmatpush1.bf16.msra.mxu1 %v1667_v9  ;;  %v1723_v0 = vld [vmem:[#allocation8 + $0x26c] ss:$16 sps:$4 sm:$0xff]  }
  0x8a   :  { %1158 = vmatprep.subr.bf16.mxu0 %v1672_v2  ;;  %1240 = vmatprep.subr.bf16.mxu1 %v1675_v11  ;;  %v1718_v2 = vld [vmem:[#allocation8 + $0x260] ss:$16 sps:$4 sm:$0xff]   ;;  %v1735_v9 = vld [vmem:[#allocation8 + $0x2ac] ss:$16 sps:$4 sm:$0xff]   ;;  %v1733_v11 = vld [vmem:[#allocation8 + $0x2a8] ss:$16 sps:$4 sm:$0xff]  }
  0x8d   :  { %1159 = vmatpush1.bf16.msra.mxu0 %v1670_v4  ;;  %1241 = vmatpush1.bf16.msra.mxu1 %v1673_v13  ;;  %v1726_v4 = vld [vmem:[#allocation8 + $0x284] ss:$16 sps:$4 sm:$0xff]   ;;  %v1741_v13 = vld [vmem:[#allocation8 + $0x2cc] ss:$16 sps:$4 sm:$0xff]  }
  0x8e   :  { %1160 = vmatprep.subr.bf16.mxu0 %v1678_v6  ;;  %1242 = vmatprep.subr.bf16.mxu1 %v1681_v14  ;;  %v1724_v6 = vld [vmem:[#allocation8 + $0x280] ss:$16 sps:$4 sm:$0xff]  }
  0x8f   :  { %v1736_v14 = vld [vmem:[#allocation8 + $0x2c0] ss:$16 sps:$4 sm:$0xff]  }
  0x91   :  { %1161 = vmatpush1.bf16.msra.mxu0 %v1676_v8  ;;  %1243 = vmatpush1.bf16.msra.mxu1 %v1679_v15  ;;  %v1732_v8 = vld [vmem:[#allocation8 + $0x2a4] ss:$16 sps:$4 sm:$0xff]   ;;  %v1739_v15 = vld [vmem:[#allocation8 + $0x2c8] ss:$16 sps:$4 sm:$0xff]  }
  0x92   :  { %1162 = vmatprep.subr.bf16.mxu0 %v1684_v10  ;;  %1244 = vmatprep.subr.bf16.mxu1 %v1687_v16  ;;  %v1730_v10 = vld [vmem:[#allocation8 + $0x2a0] ss:$16 sps:$4 sm:$0xff]   ;;  %v1744_v16 = vld [vmem:[#allocation8 + $0x2e4] ss:$16 sps:$4 sm:$0xff]  }
  0x95   :  { %1163 = vmatpush1.bf16.msra.mxu0 %v1682_v12  ;;  %1245 = vmatpush1.bf16.msra.mxu1 %v1685_v17  ;;  %v1738_v12 = vld [vmem:[#allocation8 + $0x2c4] ss:$16 sps:$4 sm:$0xff]   ;;  %v1747_v17 = vld [vmem:[#allocation8 + $0x2ec] ss:$16 sps:$4 sm:$0xff]  }
  0x96   :  { %1164 = vmatprep.subr.bf16.mxu0 %v1690_v18  ;;  %1246 = vmatprep.subr.bf16.mxu1 %v1693_v19  ;;  %v1742_v18 = vld [vmem:[#allocation8 + $0x2e0] ss:$16 sps:$4 sm:$0xff]   ;;  %v1745_v19 = vld [vmem:[#allocation8 + $0x2e8] ss:$16 sps:$4 sm:$0xff]  }
  0x99   :  { %1165 = vmatpush1.bf16.msra.mxu0 %v1688_v20  ;;  %1247 = vmatpush1.bf16.msra.mxu1 %v1691_v21  ;;  %v1750_v20 = vld [vmem:[#allocation8 + $0x304] ss:$16 sps:$4 sm:$0xff]   ;;  %v1753_v21 = vld [vmem:[#allocation8 + $0x30c] ss:$16 sps:$4 sm:$0xff]  }
  0x9a   :  { %1166 = vmatprep.subr.bf16.mxu0 %v1696_v22  ;;  %1248 = vmatprep.subr.bf16.mxu1 %v1699_v23  ;;  %v1748_v22 = vld [vmem:[#allocation8 + $0x300] ss:$16 sps:$4 sm:$0xff]   ;;  %v1751_v23 = vld [vmem:[#allocation8 + $0x308] ss:$16 sps:$4 sm:$0xff]  }
  0x9d   :  { %1167 = vmatpush1.bf16.msra.mxu0 %v1694_v24  ;;  %1249 = vmatpush1.bf16.msra.mxu1 %v1697_v25  ;;  %v1756_v24 = vld [vmem:[#allocation8 + $0x324] ss:$16 sps:$4 sm:$0xff]   ;;  %v1759_v25 = vld [vmem:[#allocation8 + $0x32c] ss:$16 sps:$4 sm:$0xff]  }
  0x9e   :  { %1177 = vmatprep.subr.bf16.mxu0 %v1702_v26  ;;  %1259 = vmatprep.subr.bf16.mxu1 %v1705_v27  ;;  %v1754_v26 = vld [vmem:[#allocation8 + $0x320] ss:$16 sps:$4 sm:$0xff]   ;;  %v1757_v27 = vld [vmem:[#allocation8 + $0x328] ss:$16 sps:$4 sm:$0xff]  }
 0x133   :  { %v288_v35 = vpop.f32.mrb[0].mxu0  ;;  %v2052_v51 = vpop.f32.mrb[0].mxu1 }
 0x134   :  { %v289_v36 = vadd.f32 %v288_v35, %v113_v33  ;;  %v290_v37 = vpop.f32.mrb[1].mxu0  ;;  %v331_v54 = vpop.f32.mrb[1].mxu1  ;;  %v1762_v33 = vld [vmem:[#allocation8 + $0x344] ss:$16 sps:$4 sm:$0xff]   ;;  %v1760_v35 = vld [vmem:[#allocation8 + $0x340] ss:$16 sps:$4 sm:$0xff]  }
 0x135   :  { %v291_v38 = vadd.f32 %v290_v37, %v117_v34  ;;  %v292_v39 = vpop.f32.mrb[2].mxu0  ;;  %v332_v57 = vadd.f32 %v331_v54, %v125_v50  ;;  %v333_v58 = vpop.f32.mrb[2].mxu1  ;;  %v1765_v34 = vld [vmem:[#allocation8 + $0x34c] ss:$16 sps:$4 sm:$0xff]   ;;  %v1768_v37 = vld [vmem:[#allocation8 + $0x364] ss:$16 sps:$4 sm:$0xff]  }
 0x136   :  { %v336_v40 = vmax.f32 %v289_v36, 0.0  ;;  %v293_v41 = vpop.f32.mrb[3].mxu0  ;;  %v334_v59 = vpop.f32.mrb[3].mxu1  ;;  %v1763_v36 = vld [vmem:[#allocation8 + $0x348] ss:$16 sps:$4 sm:$0xff]  }
 0x137   :  { %v337_v43 = vmax.f32 %v291_v38, 0.0  ;;  %v339_v60 = vmax.f32 %v332_v57, 0.0  ;;  %v1771_v38 = vld [vmem:[#allocation8 + $0x36c] ss:$16 sps:$4 sm:$0xff]   ;;  %v1766_v39 = vld [vmem:[#allocation8 + $0x360] ss:$16 sps:$4 sm:$0xff]  }
 0x138   :  { %v342_v47 = vpack.c.bf16 %v336_v40, %v336_v40  ;;  %v1769_v40 = vld [vmem:[#allocation8 + $0x368] ss:$16 sps:$4 sm:$0xff]   ;;  %v1774_v41 = vld [vmem:[#allocation8 + $0x384] ss:$16 sps:$4 sm:$0xff]   ;;  %v1789_v54 = vld [vmem:[#allocation8 + $0x3cc] ss:$16 sps:$4 sm:$0xff]  }
 0x139   :  { %v343_v44 = vpack.c.bf16 %v337_v43, %v337_v43  ;;  %v345_v1 = vpack.c.bf16 %v339_v60, %v339_v60  ;;  %v1777_v43 = vld [vmem:[#allocation8 + $0x38c] ss:$16 sps:$4 sm:$0xff]   ;;  %v1781_v50 = vld [vmem:[#allocation8 + $0x3a8] ss:$16 sps:$4 sm:$0xff]   ;;  %v1790_v59 = vld [vmem:[#allocation8 + $0x3e0] ss:$16 sps:$4 sm:$0xff]  }
 0x13a   :  { %v1795_v58 = vld [vmem:[#allocation8 + $0x3ec] ss:$16 sps:$4 sm:$0xff]   ;;  %v1793_v60 = vld [vmem:[#allocation8 + $0x3e8] ss:$16 sps:$4 sm:$0xff]  }
 0x13b   :  { %1168 = vmatprep.mubr.bf16.mxu0 %v343_v44  ;;  %1250 = vmatprep.mubr.bf16.mxu1 %v343_v44  ;;  %v1772_v44 = vld [vmem:[#allocation8 + $0x380] ss:$16 sps:$4 sm:$0xff]  }
 0x13c   :  { %1169 = vmatmul.mubr.bf16.vlgmr.msra.gmra.mrb[4].mxu0 %v342_v47  ;;  %1251 = vmatmul.mubr.bf16.vlgmr.msra.gmra.mrb[4].mxu1 %v342_v47  ;;  %v1780_v47 = vld [vmem:[#allocation8 + $0x3a4] ss:$16 sps:$4 sm:$0xff]  }
 0x13d   :  { %1178 = vmatpush1.bf16.msra.mxu0 %v1700_v45  ;;  %1260 = vmatpush1.bf16.msra.mxu1 %v1703_v46  ;;  %v1775_v45 = vld [vmem:[#allocation8 + $0x388] ss:$16 sps:$4 sm:$0xff]   ;;  %v120_v46 = vsub.s32 2, %v2030_v29  ;;  %v1792_v29 = vld [vmem:[#allocation8 + $0x3e4] ss:$16 sps:$4 sm:$0xff]  }
 0x13e   :  { %1179 = vmatprep.subr.bf16.mxu0 %v1708_v48  ;;  %1261 = vmatprep.subr.bf16.mxu1 %v1711_v49  ;;  %v1783_v48 = vld [vmem:[#allocation8 + $0x3ac] ss:$16 sps:$4 sm:$0xff]   ;;  %v1778_v49 = vld [vmem:[#allocation8 + $0x3a0] ss:$16 sps:$4 sm:$0xff]  }
 0x13f   :  { %1209 = vmatprep.mubr.bf16.mxu0 %v345_v1  ;;  %1291 = vmatprep.mubr.bf16.mxu1 %v345_v1 }
 0x141   :  { %1180 = vmatpush1.bf16.msra.mxu0 %v1706_v52  ;;  %1262 = vmatpush1.bf16.msra.mxu1 %v1709_v53  ;;  %v121_v52 = vrot.slane %v2038_v31, %v120_v46  ;;  %v1786_v53 = vld [vmem:[#allocation8 + $0x3c4] ss:$16 sps:$4 sm:$0xff]  }
 0x142   :  { %1181 = vmatprep.subr.bf16.mxu0 %v1714_v55  ;;  %1263 = vmatprep.subr.bf16.mxu1 %v1717_v56  ;;  %v1784_v55 = vld [vmem:[#allocation8 + $0x3c0] ss:$16 sps:$4 sm:$0xff]   ;;  %v1787_v56 = vld [vmem:[#allocation8 + $0x3c8] ss:$16 sps:$4 sm:$0xff]  }
 0x143   :  { %v330_v57 = vadd.f32 %v2052_v51, %v121_v52  ;;  %v474_v51 = vld [vmem:[%s2098_s4] sm:$0xf]  ;;  %s1935_s4 = smov [#allocation11]  }
 0x144   :  { %v483_v1 = vrot.slane %v474_v51, %v2041_v32 }
 0x145   :  { %1182 = vmatpush1.bf16.msra.mxu0 %v1712_v61  ;;  %1264 = vmatpush1.bf16.msra.mxu1 %v1715_v62  ;;  %v338_v61 = vmax.f32 %v330_v57, 0.0  ;;  %v1304_v62 = vld [vmem:[%s2099_s5] sm:$0xf]  ;;  %s1375_s5 = sshll.u32 %s1935_s4, 4  ;;  %s1376_s5 = int_to_ptr.vmem [resolvable:$true] %s1375_s5 }
 0x146   :  { %1183 = vmatprep.subr.bf16.mxu0 %v1720_v63  ;;  %1265 = vmatprep.subr.bf16.mxu1 %v1723_v0  ;;  %v479_v63 = vrot.slane %v474_v51, %v2033_v30  ;;  %v487_v0 = vrot.slane %v474_v51, %v120_v46  ;;  %s1874_s27 = scalar_lea.vmem %s1376_s5, 512  ;;  %p1879_p2 = scmp.lt.s32.totalorder %s1376_s5, %s1376_s5 }
 0x147   :  { %v344_v31 = vpack.c.bf16 %v338_v61, %v338_v61  ;;  %p1875_p1 = scmp.ne.s32.totalorder %s1376_s5, %s1874_s27  ;;  %p1880_p3 = scmp.lt.s32.totalorder %s1874_s27, %s1874_s27 }
 0x149   :  { %1184 = vmatpush1.bf16.msra.mxu0 %v1718_v2  ;;  %1266 = vmatpush1.bf16.msra.mxu1 %v1721_v3  ;;  %v491_v2 = vrot.slane %v474_v51, %v2048_v42  ;;  %v1317_v3 = vrot.slane %v1304_v62, %v120_v46  ;;  %p1881_p4 = por %p1880_p3, %p1879_p2 }
 0x14a   :  { %1185 = vmatprep.subr.bf16.mxu0 %v1726_v4  ;;  %1267 = vmatprep.subr.bf16.mxu1 %v1729_v5  ;;  %v1309_v4 = vrot.slane %v1304_v62, %v2033_v30  ;;  %v1313_v30 = vrot.slane %v1304_v62, %v2041_v32 }
 0x14b   :  { %p1882_p5 = pnand %p1881_p4, %p1875_p1 }
 0x14d   :  { %1186 = vmatpush1.bf16.msra.mxu0 %v1724_v6  ;;  %1268 = vmatpush1.bf16.msra.mxu1 %v1727_v7 }
 0x14e   :  { %1187 = vmatprep.subr.bf16.mxu0 %v1732_v8  ;;  %1269 = vmatprep.subr.bf16.mxu1 %v1735_v9 }
 0x151   :  { %1188 = vmatpush1.bf16.msra.mxu0 %v1730_v10  ;;  %1270 = vmatpush1.bf16.msra.mxu1 %v1733_v11 }
 0x152   :  { %1189 = vmatprep.subr.bf16.mxu0 %v1738_v12  ;;  %1271 = vmatprep.subr.bf16.mxu1 %v1741_v13 }
 0x155   :  { %1190 = vmatpush1.bf16.msra.mxu0 %v1736_v14  ;;  %1272 = vmatpush1.bf16.msra.mxu1 %v1739_v15 }
 0x156   :  { %1191 = vmatprep.subr.bf16.mxu0 %v1744_v16  ;;  %1273 = vmatprep.subr.bf16.mxu1 %v1747_v17 }
 0x159   :  { %1192 = vmatpush1.bf16.msra.mxu0 %v1742_v18  ;;  %1274 = vmatpush1.bf16.msra.mxu1 %v1745_v19  ;;  %v1321_v19 = vrot.slane %v1304_v62, %v2048_v42 }
 0x15a   :  { %1193 = vmatprep.subr.bf16.mxu0 %v1750_v20  ;;  %1275 = vmatprep.subr.bf16.mxu1 %v1753_v21 }
 0x15d   :  { %1194 = vmatpush1.bf16.msra.mxu0 %v1748_v22  ;;  %1276 = vmatpush1.bf16.msra.mxu1 %v1751_v23 }
 0x15e   :  { %1195 = vmatprep.subr.bf16.mxu0 %v1756_v24  ;;  %1277 = vmatprep.subr.bf16.mxu1 %v1759_v25 }
 0x161   :  { %1196 = vmatpush1.bf16.msra.mxu0 %v1754_v26  ;;  %1278 = vmatpush1.bf16.msra.mxu1 %v1757_v27 }
 0x162   :  { %1197 = vmatprep.subr.bf16.mxu0 %v1762_v33  ;;  %1279 = vmatprep.subr.bf16.mxu1 %v1765_v34 }
 0x165   :  { %1198 = vmatpush1.bf16.msra.mxu0 %v1760_v35  ;;  %1280 = vmatpush1.bf16.msra.mxu1 %v1763_v36 }
 0x166   :  { %1199 = vmatprep.subr.bf16.mxu0 %v1768_v37  ;;  %1281 = vmatprep.subr.bf16.mxu1 %v1771_v38 }
 0x169   :  { %1200 = vmatpush1.bf16.msra.mxu0 %v1766_v39  ;;  %1282 = vmatpush1.bf16.msra.mxu1 %v1769_v40 }
 0x16a   :  { %1201 = vmatprep.subr.bf16.mxu0 %v1774_v41  ;;  %1283 = vmatprep.subr.bf16.mxu1 %v1777_v43 }
 0x16d   :  { %1202 = vmatpush1.bf16.msra.mxu0 %v1772_v44  ;;  %1284 = vmatpush1.bf16.msra.mxu1 %v1775_v45 }
 0x16e   :  { %1203 = vmatprep.subr.bf16.mxu0 %v1780_v47  ;;  %1285 = vmatprep.subr.bf16.mxu1 %v1783_v48 }
 0x171   :  { %1204 = vmatpush1.bf16.msra.mxu0 %v1778_v49  ;;  %1286 = vmatpush1.bf16.msra.mxu1 %v1781_v50 }
 0x172   :  { %1205 = vmatprep.subr.bf16.mxu0 %v1786_v53  ;;  %1287 = vmatprep.subr.bf16.mxu1 %v1789_v54 }
 0x175   :  { %1206 = vmatpush1.bf16.msra.mxu0 %v1784_v55  ;;  %1288 = vmatpush1.bf16.msra.mxu1 %v1787_v56 }
 0x176   :  { %1207 = vmatprep.subr.bf16.mxu0 %v1792_v29  ;;  %1289 = vmatprep.subr.bf16.mxu1 %v1795_v58 }
 0x179   :  { %1208 = vmatpush1.bf16.msra.mxu0 %v1790_v59  ;;  %1290 = vmatpush1.bf16.msra.mxu1 %v1793_v60 }
 0x17c   :  { %1210 = vmatmul.mubr.bf16.vlgmr.msra.gmra.mrb[4].mxu0 %v344_v31  ;;  %1292 = vmatmul.mubr.bf16.vlgmr.msra.gmra.mrb[4].mxu1 %v344_v31 }
 0x24f   :  { %v1211_v5 = vpop.f32.mrb[4].mxu0  ;;  %v1293_v6 = vpop.f32.mrb[4].mxu1 }
 0x250   :  { %v1547_v7 = vadd.f32 %v1211_v5, %v479_v63  ;;  %v1549_v8 = vadd.f32 %v1293_v6, %v487_v0  ;;  %v1213_v9 = vpop.f32.mrb[5].mxu0  ;;  %v1295_v10 = vpop.f32.mrb[5].mxu1 }
 0x251   :  { %v1548_v11 = vadd.f32 %v1213_v9, %v483_v1  ;;  %v1550_v12 = vadd.f32 %v1295_v10, %v491_v2  ;;  %v1215_v13 = vpop.f32.mrb[6].mxu0  ;;  %v1297_v14 = vpop.f32.mrb[6].mxu1 }
 0x252   :  { %1300 = vst [vmem:[#allocation11] sm:$0xff] %v1547_v7  ;;  %1302 = vst [vmem:[#allocation11 + $0x10] sm:$0xff] %v1549_v8  ;;  %v1216_v15 = vpop.f32.mrb[7].mxu0  ;;  %v1298_v16 = vpop.f32.mrb[7].mxu1  ;;  %v1328_v17 = vmul.f32 %v1549_v8, %v1317_v3  ;;  %v1326_v18 = vmul.f32 %v1547_v7, %v1309_v4 }
 0x253   :  { %1301 = vst [vmem:[#allocation11 + $0x8] sm:$0xff] %v1548_v11  ;;  %1303 = vst [vmem:[#allocation11 + $0x18] sm:$0xff] %v1550_v12  ;;  %v1329_v20 = vmul.f32 %v1550_v12, %v1321_v19  ;;  %v1327_v21 = vmul.f32 %v1548_v11, %v1313_v30 }
 0x254   :  { %1344 = vadd.xlane.f32.xlu1 %v1328_v17  ;;  %1330 = vadd.xlane.f32.xlu0 %v1326_v18 }
 0x258   :  { %1351 = vadd.xlane.f32.xlu1 %v1329_v20  ;;  %1337 = vadd.xlane.f32.xlu0 %v1327_v21 }
 0x259   :  { %1885 = shalt.err (!%p1882_p5)
}
 0x25a   :  { %s1886_s1 = scalar_lea.hbm %s2102_s8, 512 }
 0x25b   :  { %p1887_p6 = scmp.ne.s32.totalorder %s2102_s8, %s1886_s1  ;;  %p1890_p7 = scmp.lt.u32.totalorder %s1886_s1, %s2102_s8 }
 0x25d   :  { %p1892_p8 = pnand %p1890_p7, %p1887_p6 }
 0x25f   :  { %1895 = shalt.err (!%p1892_p8)
}
 0x260   :  { %1378 = dma.vmem_to_hbm [thread:$0]  %s1376_s5, 512, %s2102_s8, [#allocation12]   ;;  %v341_v32 = vand.u32 127, %v110_v28 }
 0x261   :  { %s1332_s14 = sld [smem:[#allocation9]]  ;;  %s1544_s17 = sld [smem:[#allocation9 + $0x1]] }
 0x262   :  { %s1545_s18 = sld [smem:[#allocation9 + $0x2]]  ;;  %s1546_s19 = sld [smem:[#allocation9 + $0x3]]  ;;  %vm1335_vm1 = vcmp.eq.s32.totalorder %v341_v32, 0  ;;  %vm1342_vm2 = vcmp.eq.s32.totalorder %v341_v32, 1  ;;  %vm1349_vm3 = vcmp.eq.s32.totalorder %v341_v32, 2  ;;  %vm1356_vm4 = vcmp.eq.s32.totalorder %v341_v32, 3 }
 0x263   :  { %s1936_s8 = smov [#allocation10]  }
 0x264   :  { %s1365_s21 = sshll.u32 %s1936_s8, 4  ;;  %s1366_s21 = int_to_ptr.vmem [resolvable:$true] %s1365_s21 }
 0x265   :  { %s1896_s23 = scalar_lea.vmem %s1366_s21, 128  ;;  %p1901_p10 = scmp.lt.s32.totalorder %s1366_s21, %s1366_s21 }
 0x266   :  { %p1897_p9 = scmp.ne.s32.totalorder %s1366_s21, %s1896_s23  ;;  %p1902_p11 = scmp.lt.s32.totalorder %s1896_s23, %s1896_s23 }
 0x267   :  { %v1333_v42 = vstv %s1332_s14  ;;  %v1340_v25 = vstv %s1544_s17 }
 0x268   :  { %v1347_v26 = vstv %s1545_s18  ;;  %v1354_v27 = vstv %s1546_s19  ;;  %p1903_p12 = por %p1902_p11, %p1901_p10 }
 0x26a   :  { %p1904_p13 = pnand %p1903_p12, %p1897_p9 }
 0x2e1   :  { %v1345_v22 = vpop.xlane.xlu1 %1344  ;;  %v1331_v23 = vpop.xlane.xlu0 %1330 }
 0x2e2   :  { %v1334_v24 = vadd.f32 %v1333_v42, %v1331_v23  ;;  %v1348_v36 = vadd.f32 %v1347_v26, %v1345_v22 }
 0x2e4   :  { %v1336_v37 = vsel %vm1335_vm1, %v1334_v24, 0.0 }
 0x2e5   :  { %v1352_v33 = vpop.xlane.xlu1 %1351  ;;  %v1338_v34 = vpop.xlane.xlu0 %1337 }
 0x2e6   :  { %v1341_v35 = vadd.f32 %v1340_v25, %v1338_v34  ;;  %v1355_v38 = vadd.f32 %v1354_v27, %v1352_v33 }
 0x2e8   :  { %v1343_v28 = vsel %vm1342_vm2, %v1341_v35, %v1336_v37 }
 0x2e9   :  { %v1350_v39 = vsel %vm1349_vm3, %v1348_v36, %v1343_v28 }
 0x2ea   :  { %v1357_v40 = vsel %vm1356_vm4, %v1355_v38, %v1350_v39 }
 0x2eb   :  { %1358 = vst [vmem:[#allocation10] sm:$0xff] %v1357_v40 }
 0x2ec   :  { %1907 = shalt.err (!%p1904_p13)
}
 0x2ed   :  { %s1908_s20 = scalar_lea.hbm %s2101_s7, 128 }
 0x2ee   :  { %p1909_p0 = scmp.ne.s32.totalorder %s2101_s7, %s1908_s20  ;;  %p1912_p1 = scmp.lt.u32.totalorder %s1908_s20, %s2101_s7 }
 0x2f0   :  { %p1914_p2 = pnand %p1912_p1, %p1909_p0 }
 0x2f2   :  { %1917 = shalt.err (!%p1914_p2)
}
 0x2f3   :  { %1368 = dma.vmem_to_hbm [thread:$0]  %s1366_s21, 128, %s2101_s7, [#allocation4]  }
 0x2f4   :  { %1924 = dma.done.wait [#allocation4], 128  }
 0x2f5   :  { %1925 = vsyncadd [#allocation4], 4294967168 }
 0x2f6   :  { %1926 = dma.done.wait [#allocation12], 512  }
 0x2f7   :  { %1927 = vsyncadd [#allocation12], 4294966784 }
 0x2f8   :  { %1385 = vsyncpa [#allocation3], 1 }
 0x2f9   :  { %1386 = vsyncpa [#allocation7], 1 }
 0x2fa   :  { %1387 = vsyncpa [#allocation4], 1 }
 0x2fb   :  { %1388 = vsyncpa [#allocation12], 1 }
 0x2fc   :  { %1389 = vsyncpa [#allocation5], 1 }

</bundles_post_ra>
